<compile_context>
chip_gen: v6e
topology: v6e:2x2x1
jax: 0.10.0
libtpu: 0.0.40
codegen_flags: <defaults>
</compile_context>

<pallas_src>
import functools

import jax
import jax.numpy as jnp
from jax.experimental import pallas as pl
from jax.experimental.pallas import tpu as pltpu

EPS = 1e-5


# ---------------------------------------------------------------------------
# Phase 1: global per-feature batch statistics, accumulated over row tiles.
# Row reduction runs on the MXU; per-split partial sums combined on host.
# ---------------------------------------------------------------------------
def bn_stats_kernel(x_ref, pivot_ref, ones_ref, sum_ref, sumsq_ref,
                    *, n, tn, tiles_per_split):
    i_split = pl.program_id(0)      # parallel split (both cores on v7x)
    i_tile = pl.program_id(1)       # serial reduction within the split

    @pl.when(i_tile == 0)
    def _():
        sum_ref[...] = jnp.zeros_like(sum_ref)
        sumsq_ref[...] = jnp.zeros_like(sumsq_ref)

    # Unclamped global tile index -> row-validity mask.  Rows >= n belong to a
    # ragged tail (stale VMEM garbage) or a clamped duplicate tile; zero them
    # before they touch the MXU (also scrubs possible NaN/Inf garbage).
    tile = i_split * tiles_per_split + i_tile
    rid = tile * tn + jax.lax.broadcasted_iota(jnp.int32, (tn, 1), 0)
    xc = jnp.where(rid < n, x_ref[...] - pivot_ref[...], 0.0)       # (TN, F)

    ones = ones_ref[...]                                            # (8, TN)
    # MXU reductions (all 8 result rows are identical; host uses row 0).
    sum_ref[...] += jnp.dot(ones, xc, preferred_element_type=jnp.float32)
    sumsq_ref[...] += jnp.dot(ones, xc * xc,
                              preferred_element_type=jnp.float32)


# ---------------------------------------------------------------------------
# Phase 2: streaming per-row-tile kernel.  BN already folded into W1/b1.
# ---------------------------------------------------------------------------
def edge_glam_tile_kernel(x_ref, w1_ref, b1_ref, w2_ref, b2_ref, out_ref,
                          *, lane_dense, use_bf16):
    x = x_ref[...]                                      # (TN, F)
    w1 = w1_ref[...]                                    # (F, H)
    if use_bf16:
        x = x.astype(jnp.bfloat16)
        w1 = w1.astype(jnp.bfloat16)
    h = jnp.dot(x, w1, preferred_element_type=jnp.float32)          # MXU
    h = jnp.maximum(h + b1_ref[...], 0.0)               # (TN, H) relu

    if lane_dense:
        # output_ == 1: compute layer 2 as (8,H) x (TN,H)^T so the tile result
        # is a lane-dense (1, TN) slab -> one dense vst instead of TN masked
        # single-lane stores.
        w2 = w2_ref[...]                                 # (8, H)
        if use_bf16:
            w2 = w2.astype(jnp.bfloat16)
            h = h.astype(jnp.bfloat16)   # halves the XLU relayout on v7x
        o = jnp.einsum("oh,nh->on", w2, h,
                       preferred_element_type=jnp.float32)          # (8, TN)
        out_ref[...] = jax.nn.sigmoid(o[0:1, :] + b2_ref[0, 0])     # b2 in SMEM
    else:
        # General output_ > 1 fallback (torch.squeeze(h, 1) is a no-op there).
        # TODO(synk): for 1 < OUT < 128 this still emits lane-masked stores; if
        #             that path matters, emit a transposed (OUT, TN) slab.
        o = jnp.dot(h, w2_ref[...], preferred_element_type=jnp.float32)
        out_ref[...] = jax.nn.sigmoid(o + b2_ref[...])   # (TN, OUT)


def edge_glam_forward(x, gamma, beta, w1, b1, w2, b2, *,
                      row_tile=16384, stats_splits=2, use_bf16=False):
    """x: (N, F) f32.  Returns sigmoid output, squeezed along dim 1 if OUT==1.

    Weights use the [in, out] convention: w1 (F, H), w2 (H, OUT); b1 (1, H),
    b2 (1, OUT); gamma/beta (1, F).
    """
    n, f = x.shape
    h_dim = w1.shape[1]
    out_dim = w2.shape[1]

    # Row tile: multiple of 128 (lane-dense output), sized to amortize the
    # ~0.35us/step overhead.  Default 16384 rows -> 2 MiB of x per block; total
    # per-call VMEM stays ~10-15 MiB, well inside v7x's 64 MiB physical VMEM.
    tn = max(128, min(int(row_tile), pl.cdiv(n, 128) * 128))
    tn = (tn // 128) * 128
    num_tiles = pl.cdiv(n, tn)

    # ---- Phase 1: batch statistics (single pass over x, both cores) --------
    splits = max(1, min(int(stats_splits), num_tiles))
    tps = pl.cdiv(num_tiles, splits)

    pivot = x[0:1, :]                              # (1, F) cancellation pivot
    ones = jnp.ones((8, tn), jnp.float32)

    # Clamp the tile index so over-allocated split slots re-read a valid block
    # (their contribution is zeroed by the in-kernel row mask).
    x_stats_spec = pl.BlockSpec(
        (tn, f), lambda s, i: (jnp.minimum(s * tps + i, num_tiles - 1), 0))

    stats_est = (2 * tn * f + 2 * 8 * tn + 3 * tn * f) * 4
    s_part, ss_part = pl.pallas_call(
        functools.partial(bn_stats_kernel, n=n, tn=tn, tiles_per_split=tps),
        out_shape=(jax.ShapeDtypeStruct((splits * 8, f), jnp.float32),
                   jax.ShapeDtypeStruct((splits * 8, f), jnp.float32)),
        grid=(splits, tps),
        in_specs=[x_stats_spec,
                  pl.BlockSpec((1, f), lambda s, i: (0, 0)),
                  pl.BlockSpec((8, tn), lambda s, i: (0, 0))],
        out_specs=(pl.BlockSpec((8, f), lambda s, i: (s, 0)),
                   pl.BlockSpec((8, f), lambda s, i: (s, 0))),
        compiler_params=pltpu.CompilerParams(
            dimension_semantics=("parallel", "arbitrary"),
            vmem_limit_bytes=int(min(2 * stats_est + (4 << 20), 48 << 20))),
        cost_estimate=pl.CostEstimate(
            flops=4 * n * f, transcendentals=0, bytes_accessed=n * f * 4),
    )(x, pivot, ones)

    # Each 8-row slab holds identical rows; take row 0 per split and combine.
    s_sum = s_part[::8].sum(axis=0, keepdims=True)     # (1, F) sum(x - pivot)
    s_sq = ss_part[::8].sum(axis=0, keepdims=True)     # (1, F) sum((x-pivot)^2)

    # ---- Fold BatchNorm into Linear1 (tiny (F,H) work, amortized over N) ----
    inv_n = 1.0 / n
    d_mean = s_sum * inv_n
    mean = pivot + d_mean
    var = jnp.maximum(s_sq * inv_n - d_mean * d_mean, 0.0)   # biased variance
    scale = gamma * jax.lax.rsqrt(var + EPS)                  # (1, F)
    shift = beta - mean * scale                               # (1, F)
    w1_eff = w1 * scale.reshape(f, 1)                         # (F, H)
    b1_eff = shift @ w1 + b1                                  # (1, H)

    # ---- Phase 2: streaming MLP over row tiles ------------------------------
    lane_dense = (out_dim == 1)
    kernel = functools.partial(edge_glam_tile_kernel,
                               lane_dense=lane_dense, use_bf16=use_bf16)
    grid = (num_tiles,)
    x_spec = pl.BlockSpec((tn, f), lambda i: (i, 0))

    def const_spec(shape):   # grid-invariant block (fetched once)
        return pl.BlockSpec(shape, lambda i: (0,) * len(shape))

    main_est = (2 * tn * f + tn * h_dim + 8 * tn) * 4
    if use_bf16:
        main_est += tn * (f + h_dim) * 2
    flops = 2 * n * f * h_dim + 2 * n * h_dim * out_dim

    if lane_dense:
        w2_arg = jnp.tile(w2.reshape(1, h_dim), (8, 1))       # (8, H)
        b2_arg = b2.reshape(1, 1)                              # scalar -> SMEM
        in_specs = [x_spec,
                    const_spec((f, h_dim)),
                    const_spec((1, h_dim)),
                    const_spec((8, h_dim)),
                    pl.BlockSpec(memory_space=pltpu.MemorySpace.SMEM)]
        out_shape = jax.ShapeDtypeStruct((1, n), jnp.float32)
        out_specs = pl.BlockSpec((1, tn), lambda i: (0, i))
        main_est += 2 * tn * 4
        out_bytes = n * 4
    else:
        w2_arg = w2
        b2_arg = b2.reshape(1, out_dim)
        in_specs = [x_spec,
                    const_spec((f, h_dim)),
                    const_spec((1, h_dim)),
                    const_spec((h_dim, out_dim)),
                    const_spec((1, out_dim))]
        out_shape = jax.ShapeDtypeStruct((n, out_dim), jnp.float32)
        out_specs = pl.BlockSpec((tn, out_dim), lambda i: (i, 0))
        main_est += 2 * tn * out_dim * 4
        out_bytes = n * out_dim * 4

    out = pl.pallas_call(
        kernel,
        out_shape=out_shape,
        grid=grid,
        in_specs=in_specs,
        out_specs=out_specs,
        compiler_params=pltpu.CompilerParams(
            dimension_semantics=("parallel",),
            vmem_limit_bytes=int(min(2 * main_est + (4 << 20), 48 << 20))),
        cost_estimate=pl.CostEstimate(
            flops=flops, transcendentals=n * out_dim,
            bytes_accessed=n * f * 4 + out_bytes
                           + (f * h_dim + h_dim * out_dim) * 4),
    )(x, w1_eff, b1_eff, w2_arg, b2_arg)

    if lane_dense:
        return out[0]              # lane-dense (1,N) slab -> (N,) squeeze(1)
    return out                     # OUT != 1: squeeze(1) is a no-op


def init_params(key, input_, h0, output_):
    """Deterministic parameter init (shapes follow the PyTorch __init__)."""
    k1, k2, k3, k4 = jax.random.split(key, 4)
    gamma = jnp.ones((1, input_), jnp.float32)
    beta = jnp.zeros((1, input_), jnp.float32)
    lim1 = 1.0 / jnp.sqrt(input_)
    w1 = jax.random.uniform(k1, (input_, h0), jnp.float32, -lim1, lim1)
    b1 = jax.random.uniform(k2, (1, h0), jnp.float32, -lim1, lim1)
    lim2 = 1.0 / jnp.sqrt(h0)
    w2 = jax.random.uniform(k3, (h0, output_), jnp.float32, -lim2, lim2)
    b2 = jax.random.uniform(k4, (1, output_), jnp.float32, -lim2, lim2)
    return gamma, beta, w1, b1, w2, b2


def _reference(x, params):
    gamma, beta, w1, b1, w2, b2 = params
    mean = jnp.mean(x, axis=0, keepdims=True)
    var = jnp.mean((x - mean) ** 2, axis=0, keepdims=True)
    x_bn = (x - mean) * jax.lax.rsqrt(var + EPS) * gamma + beta
    h_ref = jnp.maximum(x_bn @ w1 + b1, 0.0)
    return jax.nn.sigmoid(h_ref @ w2 + b2)


if __name__ == "__main__":
    # Small shapes consistent with the module: N edges, input_=32 features,
    # h=[64], output_=1 (binary edge score -> squeeze(1)).  N=300 with a
    # 128-row tile exercises multi-tile stats, the ragged (masked) last tile,
    # the clamped duplicate stats tile and the lane-dense output path.
    N, INPUT, H0, OUTPUT = 300, 32, 64, 1

    key = jax.random.PRNGKey(0)
    kx, kp = jax.random.split(key)
    x = jax.random.normal(kx, (N, INPUT), jnp.float32)
    params = init_params(kp, INPUT, H0, OUTPUT)

    y = edge_glam_forward(x, *params, row_tile=128, stats_splits=2)
    jax.block_until_ready(y)
    assert y.shape == (N,), y.shape
    assert bool(jnp.all((y >= 0.0) & (y <= 1.0)))
    y_ref = jnp.squeeze(_reference(x, params), axis=1)
    # Tolerance accounts for BN-fold reordering under default f32 MXU precision.
    assert jnp.allclose(y, y_ref, atol=3e-3), float(jnp.max(jnp.abs(y - y_ref)))

    # OUT > 1 fallback path (torch.squeeze(dim=1) is a no-op there).
    N2, OUT2 = 200, 4
    x2 = jax.random.normal(jax.random.PRNGKey(2), (N2, INPUT), jnp.float32)
    params2 = init_params(jax.random.PRNGKey(3), INPUT, H0, OUT2)
    y2 = edge_glam_forward(x2, *params2, row_tile=128, stats_splits=2)
    jax.block_until_ready(y2)
    assert y2.shape == (N2, OUT2), y2.shape
    y2_ref = _reference(x2, params2)
    assert jnp.allclose(y2, y2_ref, atol=3e-3), float(jnp.max(jnp.abs(y2 - y2_ref)))

    print("KERNEL_OK")
</pallas_src>

<mosaic_0001>
module attributes {stable_mosaic.version = 11 : i64} {
  func.func @bn_stats_kernel(%arg0: i32, %arg1: i32, %arg2: memref<128x32xf32, #tpu.memory_space<vmem>>, %arg3: memref<1x32xf32, #tpu.memory_space<vmem>>, %arg4: memref<8x128xf32, #tpu.memory_space<vmem>>, %arg5: memref<8x32xf32, #tpu.memory_space<vmem>>, %arg6: memref<8x32xf32, #tpu.memory_space<vmem>>) attributes {dimension_semantics = [#tpu.dimension_semantics<parallel>, #tpu.dimension_semantics<arbitrary>], iteration_bounds = array<i64: 2, 2>, scalar_prefetch = 0 : i64, scratch_operands = 0 : i64, tpu.core_type = #tpu.core_type<tc>, window_params = [{transform_indices = @transform_0, window_bounds = array<i64: 128, 32>}, {pipeline_mode = #tpu.pipeline_mode<synchronous>, transform_indices = @transform_1, window_bounds = array<i64: 1, 32>}, {pipeline_mode = #tpu.pipeline_mode<synchronous>, transform_indices = @transform_2, window_bounds = array<i64: 8, 128>}, {transform_indices = @transform_3, window_bounds = array<i64: 8, 32>}, {transform_indices = @transform_4, window_bounds = array<i64: 8, 32>}]} {
    %c0_i32 = arith.constant 0 : i32
    %0 = arith.cmpi eq, %arg1, %c0_i32 : i32
    %1 = arith.extui %0 : i1 to i32
    %c0_i32_0 = arith.constant 0 : i32
    %2 = arith.cmpi ne, %1, %c0_i32_0 : i32
    scf.if %2 {
      %cst_16 = arith.constant 0.000000e+00 : f32
      %29 = vector.broadcast %cst_16 : f32 to vector<8x32xf32>
      %c0_17 = arith.constant 0 : index
      %c0_18 = arith.constant 0 : index
      %30 = vector.load %arg5[%c0_17, %c0_18] : memref<8x32xf32, #tpu.memory_space<vmem>>, vector<8x32xf32>
      tpu.vector_store %arg5[%c0_17, %c0_18], %29 {strides = array<i32>} : memref<8x32xf32, #tpu.memory_space<vmem>>, vector<8x32xf32>,
      %cst_19 = arith.constant 0.000000e+00 : f32
      %31 = vector.broadcast %cst_19 : f32 to vector<8x32xf32>
      %c0_20 = arith.constant 0 : index
      %c0_21 = arith.constant 0 : index
      %32 = vector.load %arg6[%c0_20, %c0_21] : memref<8x32xf32, #tpu.memory_space<vmem>>, vector<8x32xf32>
      tpu.vector_store %arg6[%c0_20, %c0_21], %31 {strides = array<i32>} : memref<8x32xf32, #tpu.memory_space<vmem>>, vector<8x32xf32>,
    } else {
    }
    %c2_i32 = arith.constant 2 : i32
    %3 = arith.muli %arg0, %c2_i32 : i32
    %4 = arith.addi %3, %arg1 : i32
    %c128_i32 = arith.constant 128 : i32
    %5 = arith.muli %4, %c128_i32 : i32
    %6 = tpu.iota {dimensions = array<i32: 0>} : vector<128x1xi32>
    %7 = vector.broadcast %5 : i32 to vector<128x1xi32>
    %8 = arith.addi %7, %6 : vector<128x1xi32>
    %c300_i32 = arith.constant 300 : i32
    %9 = vector.broadcast %c300_i32 : i32 to vector<128x1xi32>
    %10 = arith.cmpi slt, %8, %9 : vector<128x1xi32>
    %c0 = arith.constant 0 : index
    %c0_1 = arith.constant 0 : index
    %11 = vector.load %arg2[%c0, %c0_1] : memref<128x32xf32, #tpu.memory_space<vmem>>, vector<128x32xf32>
    %c0_2 = arith.constant 0 : index
    %c0_3 = arith.constant 0 : index
    %12 = vector.load %arg3[%c0_2, %c0_3] : memref<1x32xf32, #tpu.memory_space<vmem>>, vector<1x32xf32>
    %13 = vector.broadcast %12 : vector<1x32xf32> to vector<128x32xf32>
    %14 = arith.subf %11, %13 : vector<128x32xf32>
    %cst = arith.constant 0.000000e+00 : f32
    %15 = vector.shape_cast %10 : vector<128x1xi1> to vector<128x1xi1>
    %16 = vector.broadcast %15 : vector<128x1xi1> to vector<128x32xi1>
    %17 = vector.broadcast %cst : f32 to vector<128x32xf32>
    %18 = arith.select %16, %14, %17 : vector<128x32xi1>, vector<128x32xf32>
    %c0_4 = arith.constant 0 : index
    %c0_5 = arith.constant 0 : index
    %19 = vector.load %arg4[%c0_4, %c0_5] : memref<8x128xf32, #tpu.memory_space<vmem>>, vector<8x128xf32>
    %c0_6 = arith.constant 0 : index
    %c0_7 = arith.constant 0 : index
    %20 = vector.load %arg5[%c0_6, %c0_7] : memref<8x32xf32, #tpu.memory_space<vmem>>, vector<8x32xf32>
    %cst_8 = arith.constant dense<0.000000e+00> : vector<8x32xf32>
    %21 = tpu.matmul %19, %18, %cst_8 {dimension_numbers = #tpu.dot_dimension_numbers<[1], [0], [0], [1], [0, 0, 1, 1], [], []>} : vector<8x128xf32>, vector<128x32xf32>, vector<8x32xf32> -> vector<8x32xf32>
    %22 = arith.addf %20, %21 : vector<8x32xf32>
    %c0_9 = arith.constant 0 : index
    %c0_10 = arith.constant 0 : index
    %23 = vector.load %arg5[%c0_9, %c0_10] : memref<8x32xf32, #tpu.memory_space<vmem>>, vector<8x32xf32>
    tpu.vector_store %arg5[%c0_9, %c0_10], %22 {strides = array<i32>} : memref<8x32xf32, #tpu.memory_space<vmem>>, vector<8x32xf32>,
    %c0_11 = arith.constant 0 : index
    %c0_12 = arith.constant 0 : index
    %24 = vector.load %arg6[%c0_11, %c0_12] : memref<8x32xf32, #tpu.memory_space<vmem>>, vector<8x32xf32>
    %25 = arith.mulf %18, %18 : vector<128x32xf32>
    %cst_13 = arith.constant dense<0.000000e+00> : vector<8x32xf32>
    %26 = tpu.matmul %19, %25, %cst_13 {dimension_numbers = #tpu.dot_dimension_numbers<[1], [0], [0], [1], [0, 0, 1, 1], [], []>} : vector<8x128xf32>, vector<128x32xf32>, vector<8x32xf32> -> vector<8x32xf32>
    %27 = arith.addf %24, %26 : vector<8x32xf32>
    %c0_14 = arith.constant 0 : index
    %c0_15 = arith.constant 0 : index
    %28 = vector.load %arg6[%c0_14, %c0_15] : memref<8x32xf32, #tpu.memory_space<vmem>>, vector<8x32xf32>
    tpu.vector_store %arg6[%c0_14, %c0_15], %27 {strides = array<i32>} : memref<8x32xf32, #tpu.memory_space<vmem>>, vector<8x32xf32>,
    return
  }
  func.func @transform_0(%arg0: i32, %arg1: i32) -> (i32, i32) {
    %c2_i32 = arith.constant 2 : i32
    %0 = arith.muli %arg0, %c2_i32 : i32
    %1 = arith.addi %0, %arg1 : i32
    %c2_i32_0 = arith.constant 2 : i32
    %2 = arith.minsi %1, %c2_i32_0 : i32
    %c0_i32 = arith.constant 0 : i32
    %c0_i32_1 = arith.constant 0 : i32
    return %2, %c0_i32 : i32, i32
  }
  func.func @transform_1(%arg0: i32, %arg1: i32) -> (i32, i32) {
    %c0_i32 = arith.constant 0 : i32
    %c0_i32_0 = arith.constant 0 : i32
    %c0_i32_1 = arith.constant 0 : i32
    return %c0_i32, %c0_i32_0 : i32, i32
  }
  func.func @transform_2(%arg0: i32, %arg1: i32) -> (i32, i32) {
    %c0_i32 = arith.constant 0 : i32
    %c0_i32_0 = arith.constant 0 : i32
    %c0_i32_1 = arith.constant 0 : i32
    return %c0_i32, %c0_i32_0 : i32, i32
  }
  func.func @transform_3(%arg0: i32, %arg1: i32) -> (i32, i32) {
    %c0_i32 = arith.constant 0 : i32
    %c0_i32_0 = arith.constant 0 : i32
    return %arg0, %c0_i32 : i32, i32
  }
  func.func @transform_4(%arg0: i32, %arg1: i32) -> (i32, i32) {
    %c0_i32 = arith.constant 0 : i32
    %c0_i32_0 = arith.constant 0 : i32
    return %arg0, %c0_i32 : i32, i32
  }
}

</mosaic_0001>

<bundles_post_ra>
// kernel: tpu_custom_call.1
= control target key start
LH: loop header
LB: loop body
LE: loop exit
PB: predicated region body
PF: predicated region fallthrough
CT: control target
= control target key end

     0   :  { %s1417_s0 = inlined_call_operand.vmem [shape: f32[300,32], index: 0, kind: input, shape index: {}]   ;;  %s1418_s1 = inlined_call_operand.vmem [shape: f32[1,32], index: 1, kind: input, shape index: {}]   ;;  %s1419_s2 = inlined_call_operand.vmem [shape: f32[8,128], index: 2, kind: input, shape index: {}]   ;;  %s1420_s3 = inlined_call_operand.hbm [shape: f32[16,32], index: 3, kind: output, shape index: {0}]   ;;  %s1421_s4 = inlined_call_operand.hbm [shape: f32[16,32], index: 4, kind: output, shape index: {1}]  }
   0x1   :  { %1422 = sst [smem:[#allocation8_spill]] %s1417_s0 }
   0x2   :  { %10 = vsyncpa [#allocation3], 0 }
   0x3   :  { %12 = vsyncpa [#allocation3 + $0x1], 0 }
   0x4   :  { %13 = vsyncpa [#allocation5], 0 }
   0x5   :  { %15 = vsyncpa [#allocation5 + $0x1], 0  ;;  %s1089_s15 = smov 0   ;;  %s1091_s16 = smov 0  }
   0x6   :  { %s1093_s17 = smov 0   ;;  %s1095_s18 = smov 0  }
   0x7   :  { %s1097_s19 = smov 0   ;;  %s1099_s20 = smov 0  }
   0x8   :  { %s1101_s21 = smov 0   ;;  %s1103_s22 = smov 0  }
   0x9 LB: > { %s714_s23 = sadd.s32 4294967295, %s1057_s22   ;;  %s715_s24 = sadd.s32 4294967294, %s1057_s22   ;;  %s1057_s22 = sphi %s1103_s22, %s21_s22   ;;  %s1053_s21 = sphi %s1101_s21, %s1432_s21   ;;  %s1049_s20 = sphi %s1099_s20, %s1431_s20   ;;  %s1045_s19 = sphi %s1097_s19, %s1430_s19   ;;  %s1041_s18 = sphi %s1095_s18, %s1429_s18   ;;  %s1037_s17 = sphi %s1093_s17, %s1428_s17   ;;  %s1033_s16 = sphi %s1091_s16, %s1427_s16   ;;  %s1029_s15 = sphi %s1089_s15, %s1426_s15  }
   0xa   : > { %s30_s25 = sadd.s32 1, %s1049_s20  ;;  %s33_s26 = sadd.s32 1, %s1053_s21 }
   0xb   : > { %p31_p0 = scmp.ge.s32.totalorder %s30_s25, 2  ;;  %p126_p1 = scmp.ne.s32.totalorder %s1037_s17, %s1033_s16 }
   0xc   : > { %p127_p2 = scmp.eq.s32.totalorder %s714_s23, 3  ;;  %p132_p4 = scmp.ne.s32.totalorder %s1033_s16, %s1029_s15 }
   0xd   : > { %s1434_s25 = smov (%p31_p0, %s30_s25), 0  ;;  %s1436_s26 = smov (!%p31_p0, %s33_s26), %s1053_s21 }
   0xe   : > { %p1138_p3 = por %p127_p2, %p126_p1  ;;  %p35_p5 = scmp.ge.s32.totalorder %s1436_s26, 2 }
   0xf   : > { %p133_p6 = scmp.eq.s32.totalorder %s715_s24, 3  ;;  %p720_p7 = scmp.ge.s32.totalorder %s1057_s22, 1 }
  0x10   : > { %p208_p8 = scmp.lt.s32.totalorder %s1057_s22, 5  ;;  %s1438_s26 = smov (%p35_p5, %s1436_s26), 0 }
  0x11   : > { %p1148_p9 = por %p133_p6, %p132_p4  ;;  %s113_s29 = ssub.s32 %s1053_s21, %s1438_s26 }
  0x12   : > { %p209_p10 = pnand %p720_p7, %p208_p8  ;;  %s116_s30 = sadd.s32 1, %s1037_s17 }
  0x13   : > { %p114_p11 = scmp.eq.s32.totalorder %s113_s29, 0  ;;  %s1159_s6 = sand.u32 (!%p209_p10), 1, %s1033_s16  }
  0x14   : > { %212 = sbr.rel (%p209_p10) target bundleno = 306 (0x132), region = 32  ;;  %s723_s7 = sshll.u32 (!%p209_p10), %s1045_s19, 1 }
  0x15   : > { %s1156_s5 = scalar_select %p114_p11, %s1037_s17, %s116_s30  }
  0x16   : > { %s721_s8 = sshll.u32 (!%p209_p10), %s1159_s6, 3  ;;  %s1164_s9 = sadd.s32 (!%p209_p10), %s1041_s18, %s723_s7 }
  0x17   : > { %p249_p12 = scmp.lt.s32.totalorder (!%p209_p10), %s1164_s9, 2  ;;  %s1425_s0 = sld [smem:[#allocation8_spill]] (!%p209_p10) }
  0x18   : > { %s1173_s24 = scalar_lea.vmem (!%p209_p10), [#allocation2], %s721_s8  ;;  %s1175_s29 = scalar_lea.vmem (!%p209_p10), [#allocation4], %s721_s8 }
  0x19   : > { %s250_s10 = scalar_select %p249_p12, %s1164_s9, 2 }
  0x1a   : > { %p726_p0 = scmp.ne.s32.totalorder %s1041_s18, 0 }
  0x1b   : > { %s724_s11 = sshll.u32 %s250_s10, 4 }
  0x1c   : > { %p256_p13 = scmp.lt.s32.totalorder %s724_s11, 37  ;;  %272 = sbr.rel (%p726_p0) target bundleno = 35 (0x23), region = 36 }
  0x1e   : > { %s1440_s11 = smov (!%p256_p13, %s724_s11), 37 }
  0x1f   : > { %s725_s12 = sshll.u32 %s1440_s11, 3 }
  0x20   : > { %s1171_s23 = scalar_lea.vmem %s1425_s0, %s725_s12 }
  0x21   : > { %vm273_vm0 = vcmask 261120   ;;  %v1059_v0 = vmov 0.0  }
  0x22   : > { %274 = vst.msk [vmem:[%s1173_s24] sm:$0xff] %vm273_vm0, %v1059_v0  ;;  %275 = vst.msk [vmem:[%s1175_s29] sm:$0xff] %vm273_vm0, %v1059_v0 }
  0x23 PF: > { %s728_s30 = sshll.u32 %s1164_s9, 7  ;;  %v279_v1 = vlaneseq  ;;  %v344_v2 = vld [vmem:[%s1171_s23 + $0x78] sm:$0xff]  ;;  %v1185_v3 = vld [vmem:[%s1418_s1] ss:$0 sm:$0xff]  ;;  %v343_v4 = vld [vmem:[%s1171_s23 + $0x70] sm:$0xff]  ;;  %v1060_v5 = vmov 0.0  }
  0x24   : > { %786 = vmatprep.subr.mxu0 %v1060_v5  ;;  %821 = vmatprep.subr.mxu1 %v1060_v5  ;;  %v342_v7 = vld [vmem:[%s1171_s23 + $0x68] sm:$0xff]  ;;  %vm1061_vm1 = vmmov 0   ;;  %v1195_v8 = vstv %s728_s30  ;;  %v367_v9 = vsub.f32 %v344_v2, %v1185_v3  ;;  %v366_v10 = vsub.f32 %v343_v4, %v1185_v3  ;;  %v341_v15 = vld [vmem:[%s1171_s23 + $0x60] sm:$0xff]  ;;  %v340_v24 = vld [vmem:[%s1171_s23 + $0x58] sm:$0xff]  ;;  %s748_s10 = sshll.u32 %s1045_s19, 7  ;;  %s599_s11 = sshll.u32 %s1173_s24, 4  ;;  %s1334_s11 = int_to_ptr.vmem [resolvable:$true] %s599_s11 }
  0x25   : > { %v1190_v6 = vshrl.u32 %v279_v1, 7  ;;  %818 = vmatprep.mubr.msk.f32.mxu0 %vm1061_vm1, %v1060_v5  ;;  %853 = vmatprep.mubr.msk.f32.mxu1 %vm1061_vm1, %v1060_v5  ;;  %v365_v16 = vsub.f32 %v342_v7, %v1185_v3  ;;  %v364_v25 = vsub.f32 %v341_v15, %v1185_v3  ;;  %v339_v29 = vld [vmem:[%s1171_s23 + $0x50] sm:$0xff]  ;;  %v363_v33 = vsub.f32 %v340_v24, %v1185_v3  ;;  %v338_v37 = vld [vmem:[%s1171_s23 + $0x48] sm:$0xff]  ;;  %v337_v42 = vld [vmem:[%s1171_s23 + $0x40] sm:$0xff]  ;;  %s612_s12 = sshll.u32 %s1175_s29, 4  ;;  %s1341_s7 = scalar_lea.hbm %s1421_s4, %s748_s10  ;;  %s1343_s12 = int_to_ptr.vmem [resolvable:$true] %s612_s12 }
  0x26   : > { %v362_v39 = vsub.f32 %v339_v29, %v1185_v3  ;;  %v361_v44 = vsub.f32 %v338_v37, %v1185_v3  ;;  %v336_v47 = vld [vmem:[%s1171_s23 + $0x38] sm:$0xff]  ;;  %v360_v51 = vsub.f32 %v337_v42, %v1185_v3  ;;  %v335_v55 = vld [vmem:[%s1171_s23 + $0x30] sm:$0xff]  ;;  %v334_v61 = vld [vmem:[%s1171_s23 + $0x28] sm:$0xff]  ;;  %s581_s8 = scalar_lea.sflag [#allocation3], %s1159_s6  ;;  %s935_s18 = scalar_lea.vmem %s1334_s11, 128 }
  0x27   : > { %v295_v11 = vadd.s32 120, %v1190_v6  ;;  %v294_v12 = vadd.s32 112, %v1190_v6  ;;  %v293_v13 = vadd.s32 104, %v1190_v6  ;;  %v292_v14 = vadd.s32 96, %v1190_v6  ;;  %v333_v4 = vld [vmem:[%s1171_s23 + $0x20] sm:$0xff]  ;;  %v330_v24 = vld [vmem:[%s1171_s23 + $0x8] sm:$0xff]  ;;  %p936_p1 = scmp.ne.s32.totalorder %s1334_s11, %s935_s18 }
  0x28   : > { %v291_v17 = vadd.s32 88, %v1190_v6  ;;  %v290_v18 = vadd.s32 80, %v1190_v6  ;;  %v289_v19 = vadd.s32 72, %v1190_v6  ;;  %v288_v28 = vadd.s32 64, %v1190_v6  ;;  %v329_v29 = vld [vmem:[%s1171_s23] sm:$0xff]  ;;  %s1062_s9 = smov [#allocation2]  }
  0x29   : > { %v312_v20 = vadd.s32 %v1195_v8, %v295_v11  ;;  %v311_v21 = vadd.s32 %v1195_v8, %v294_v12  ;;  %v310_v22 = vadd.s32 %v1195_v8, %v293_v13  ;;  %v309_v23 = vadd.s32 %v1195_v8, %v292_v14  ;;  %v332_v13 = vld [vmem:[%s1171_s23 + $0x18] sm:$0xff]  ;;  %v416_v37 = vld [vmem:[%s1419_s2] sm:$0xff]  ;;  %p937_p2 = pnand %p936_p1, %p1138_p3  ;;  %s939_s13 = sshll.u32 %s1062_s9, 4  ;;  %s940_s13 = int_to_ptr.vmem [resolvable:$false] %s939_s13 }
  0x2a   : > { %v308_v26 = vadd.s32 %v1195_v8, %v291_v17  ;;  %v1216_v27 = vadd.s32 %v1195_v8, %v290_v18  ;;  %v306_v36 = vadd.s32 %v1195_v8, %v289_v19  ;;  %v305_v41 = vadd.s32 %v1195_v8, %v288_v28  ;;  %v331_v19 = vld [vmem:[%s1171_s23 + $0x10] sm:$0xff]  ;;  %s1332_s23 = scalar_lea.hbm %s1420_s3, %s748_s10  ;;  %s941_s14 = scalar_lea.vmem %s940_s13, 256 }
  0x2b   : > { %vm328_vm2 = vcmp.lt.s32.totalorder %v312_v20, 300  ;;  %vm327_vm3 = vcmp.lt.s32.totalorder %v311_v21, 300  ;;  %vm326_vm4 = vcmp.lt.s32.totalorder %v310_v22, 300  ;;  %vm325_vm5 = vcmp.lt.s32.totalorder %v309_v23, 300  ;;  %v491_v42 = vld [vmem:[%s1175_s29] sm:$0xff]  ;;  %p938_p4 = pneg %p937_p2  ;;  %p942_p5 = scmp.lt.s32.totalorder %s1334_s11, %s940_s13 }
  0x2c   : > { %787 = vmatpush3.msk.msra.mxu0 %vm328_vm2, %v367_v9  ;;  %v415_v30 = vsel %vm328_vm2, %v367_v9, 0.0  ;;  %v414_v31 = vsel %vm327_vm3, %v366_v10, 0.0  ;;  %v413_v32 = vsel %vm326_vm4, %v365_v16, 0.0  ;;  %vm324_vm6 = vcmp.lt.s32.totalorder %v308_v26, 300  ;;  %p943_p6 = scmp.lt.s32.totalorder %s941_s14, %s935_s18 }
  0x2d   : > { %788 = vmatprep.subr.mxu0 %v1060_v5  ;;  %v507_v34 = vmul.f32 %v415_v30, %v415_v30  ;;  %v506_v35 = vmul.f32 %v414_v31, %v414_v31  ;;  %v412_v38 = vsel %vm325_vm5, %v364_v25, 0.0  ;;  %v505_v40 = vmul.f32 %v413_v32, %v413_v32 }
  0x2e   : > { %789 = vmatpush3.msk.msra.mxu0 %vm327_vm3, %v366_v10  ;;  %vm323_vm7 = vcmp.lt.s32.totalorder %v1216_v27, 300  ;;  %v411_v43 = vsel %vm324_vm6, %v363_v33, 0.0  ;;  %v287_v45 = vadd.s32 56, %v1190_v6  ;;  %v504_v46 = vmul.f32 %v412_v38, %v412_v38  ;;  %p944_p7 = por %p943_p6, %p942_p5 }
  0x2f   : > { %822 = vmatpush3.msra.mxu1 %v507_v34  ;;  %790 = vmatprep.subr.mxu0 %v1060_v5  ;;  %vm322_vm8 = vcmp.lt.s32.totalorder %v306_v36, 300  ;;  %v286_v48 = vadd.s32 48, %v1190_v6  ;;  %v285_v49 = vadd.s32 40, %v1190_v6  ;;  %v410_v50 = vsel %vm323_vm7, %v362_v39, 0.0 }
  0x30   : > { %823 = vmatprep.subr.mxu1 %v1060_v5  ;;  %791 = vmatpush3.msk.msra.mxu0 %vm326_vm4, %v365_v16  ;;  %v304_v52 = vadd.s32 %v1195_v8, %v287_v45  ;;  %v503_v53 = vmul.f32 %v411_v43, %v411_v43  ;;  %vm321_vm9 = vcmp.lt.s32.totalorder %v305_v41, 300  ;;  %v284_v56 = vadd.s32 32, %v1190_v6  ;;  %p945_p8 = pnand %p944_p7, %p938_p4 }
  0x31   : > { %824 = vmatpush3.msra.mxu1 %v506_v35  ;;  %792 = vmatprep.subr.mxu0 %v1060_v5  ;;  %v303_v54 = vadd.s32 %v1195_v8, %v286_v48  ;;  %v409_v57 = vsel %vm322_vm8, %v361_v44, 0.0  ;;  %v359_v58 = vsub.f32 %v336_v47, %v1185_v3  ;;  %v502_v59 = vmul.f32 %v410_v50, %v410_v50 }
  0x32   : > { %825 = vmatprep.subr.mxu1 %v1060_v5  ;;  %793 = vmatpush3.msk.msra.mxu0 %vm325_vm5, %v364_v25  ;;  %vm320_vm10 = vcmp.lt.s32.totalorder %v304_v52, 300  ;;  %v302_v60 = vadd.s32 %v1195_v8, %v285_v49  ;;  %v283_v62 = vadd.s32 24, %v1190_v6  ;;  %v408_v63 = vsel %vm321_vm9, %v360_v51, 0.0 }
  0x33   : > { %826 = vmatpush3.msra.mxu1 %v505_v40  ;;  %794 = vmatprep.subr.mxu0 %v1060_v5  ;;  %v358_v0 = vsub.f32 %v335_v55, %v1185_v3  ;;  %v501_v1 = vmul.f32 %v409_v57, %v409_v57  ;;  %vm319_vm11 = vcmp.lt.s32.totalorder %v303_v54, 300  ;;  %v301_v2 = vadd.s32 %v1195_v8, %v284_v56 }
  0x34   : > { %827 = vmatprep.subr.mxu1 %v1060_v5  ;;  %795 = vmatpush3.msk.msra.mxu0 %vm324_vm6, %v363_v33  ;;  %v282_v7 = vadd.s32 16, %v1190_v6  ;;  %v407_v9 = vsel %vm320_vm10, %v359_v58, 0.0  ;;  %v357_v10 = vsub.f32 %v334_v61, %v1185_v3  ;;  %v500_v11 = vmul.f32 %v408_v63, %v408_v63 }
  0x35   : > { %828 = vmatpush3.msra.mxu1 %v504_v46  ;;  %796 = vmatprep.subr.mxu0 %v1060_v5  ;;  %vm318_vm12 = vcmp.lt.s32.totalorder %v302_v60, 300  ;;  %v300_v12 = vadd.s32 %v1195_v8, %v283_v62  ;;  %v281_v14 = vadd.s32 8, %v1190_v6  ;;  %v406_v15 = vsel %vm319_vm11, %v358_v0, 0.0 }
  0x36   : > { %829 = vmatprep.subr.mxu1 %v1060_v5  ;;  %797 = vmatpush3.msk.msra.mxu0 %vm323_vm7, %v362_v39  ;;  %v356_v16 = vsub.f32 %v333_v4, %v1185_v3  ;;  %v499_v17 = vmul.f32 %v407_v9, %v407_v9  ;;  %vm317_vm13 = vcmp.lt.s32.totalorder %v301_v2, 300  ;;  %v299_v18 = vadd.s32 %v1195_v8, %v282_v7  ;;  %v417_v39 = vld [vmem:[%s1173_s24] sm:$0xff] }
  0x37   : > { %830 = vmatpush3.msra.mxu1 %v503_v53  ;;  %798 = vmatprep.subr.mxu0 %v1060_v5  ;;  %v405_v20 = vsel %vm318_vm12, %v357_v10, 0.0  ;;  %v355_v21 = vsub.f32 %v332_v13, %v1185_v3  ;;  %v498_v22 = vmul.f32 %v406_v15, %v406_v15  ;;  %vm316_vm14 = vcmp.lt.s32.totalorder %v300_v12, 300 }
  0x38   : > { %831 = vmatprep.subr.mxu1 %v1060_v5  ;;  %799 = vmatpush3.msk.msra.mxu0 %vm322_vm8, %v361_v44  ;;  %v298_v23 = vadd.s32 %v1195_v8, %v281_v14  ;;  %v404_v25 = vsel %vm317_vm13, %v356_v16, 0.0  ;;  %v354_v26 = vsub.f32 %v331_v19, %v1185_v3  ;;  %v497_v27 = vmul.f32 %v405_v20, %v405_v20 }
  0x39   : > { %832 = vmatpush3.msra.mxu1 %v502_v59  ;;  %800 = vmatprep.subr.mxu0 %v1060_v5  ;;  %vm315_vm15 = vcmp.lt.s32.totalorder %v299_v18, 300  ;;  %v297_v28 = vadd.s32 %v1195_v8, %v1190_v6  ;;  %v403_v30 = vsel %vm316_vm14, %v355_v21, 0.0  ;;  %v353_v31 = vsub.f32 %v330_v24, %v1185_v3 }
  0x3a   : > { %833 = vmatprep.subr.mxu1 %v1060_v5  ;;  %801 = vmatpush3.msk.msra.mxu0 %vm321_vm9, %v360_v51  ;;  %v496_v32 = vmul.f32 %v404_v25, %v404_v25  ;;  %vm314_vm0 = vcmp.lt.s32.totalorder %v298_v23, 300  ;;  %v402_v6 = vsel %vm315_vm15, %v354_v26, 0.0  ;;  %v352_v8 = vsub.f32 %v329_v29, %v1185_v3 }
  0x3b   : > { %834 = vmatpush3.msra.mxu1 %v501_v1  ;;  %802 = vmatprep.subr.mxu0 %v1060_v5  ;;  %v495_v33 = vmul.f32 %v403_v30, %v403_v30  ;;  %vm313_vm1 = vcmp.lt.s32.totalorder %v297_v28, 300  ;;  %v401_v34 = vsel %vm314_vm0, %v353_v31, 0.0  ;;  %v494_v35 = vmul.f32 %v402_v6, %v402_v6 }
  0x3c   : > { %835 = vmatprep.subr.mxu1 %v1060_v5  ;;  %803 = vmatpush3.msk.msra.mxu0 %vm320_vm10, %v359_v58  ;;  %v400_v3 = vsel %vm313_vm1, %v352_v8, 0.0  ;;  %v493_v36 = vmul.f32 %v401_v34, %v401_v34  ;;  %vm489_vm2 = vcmask 261120  }
  0x3d   : > { %836 = vmatpush3.msra.mxu1 %v500_v11  ;;  %804 = vmatprep.subr.mxu0 %v1060_v5  ;;  %v492_v38 = vmul.f32 %v400_v3, %v400_v3 }
  0x3e   : > { %837 = vmatprep.subr.mxu1 %v1060_v5  ;;  %805 = vmatpush3.msk.msra.mxu0 %vm319_vm11, %v358_v0 }
  0x3f   : > { %838 = vmatpush3.msra.mxu1 %v499_v17  ;;  %806 = vmatprep.subr.mxu0 %v1060_v5 }
  0x40   : > { %839 = vmatprep.subr.mxu1 %v1060_v5  ;;  %807 = vmatpush3.msk.msra.mxu0 %vm318_vm12, %v357_v10 }
  0x41   : > { %840 = vmatpush3.msra.mxu1 %v498_v22  ;;  %808 = vmatprep.subr.mxu0 %v1060_v5 }
  0x42   : > { %841 = vmatprep.subr.mxu1 %v1060_v5  ;;  %809 = vmatpush3.msk.msra.mxu0 %vm317_vm13, %v356_v16 }
  0x43   : > { %842 = vmatpush3.msra.mxu1 %v497_v27  ;;  %810 = vmatprep.subr.mxu0 %v1060_v5 }
  0x44   : > { %843 = vmatprep.subr.mxu1 %v1060_v5  ;;  %811 = vmatpush3.msk.msra.mxu0 %vm316_vm14, %v355_v21 }
  0x45   : > { %844 = vmatpush3.msra.mxu1 %v496_v32  ;;  %812 = vmatprep.subr.mxu0 %v1060_v5 }
  0x46   : > { %845 = vmatprep.subr.mxu1 %v1060_v5  ;;  %813 = vmatpush3.msk.msra.mxu0 %vm315_vm15, %v354_v26 }
  0x47   : > { %846 = vmatpush3.msra.mxu1 %v495_v33  ;;  %814 = vmatprep.subr.mxu0 %v1060_v5 }
  0x48   : > { %847 = vmatprep.subr.mxu1 %v1060_v5  ;;  %815 = vmatpush3.msk.msra.mxu0 %vm314_vm0, %v353_v31 }
  0x49   : > { %848 = vmatpush3.msra.mxu1 %v494_v35  ;;  %816 = vmatprep.subr.mxu0 %v1060_v5 }
  0x4a   : > { %849 = vmatprep.subr.mxu1 %v1060_v5  ;;  %817 = vmatpush3.msk.msra.mxu0 %vm313_vm1, %v352_v8 }
  0x4b   : > { %850 = vmatpush3.msra.mxu1 %v493_v36  ;;  %819 = vmatmul.mubr.f32.vlgmr.msra.gmra.mxu0 %v416_v37 }
  0x4c   : > { %851 = vmatprep.subr.mxu1 %v1060_v5 }
  0x4d   : > { %852 = vmatpush3.msra.mxu1 %v492_v38 }
  0x4e   : > { %854 = vmatmul.mubr.f32.vlgmr.msra.gmra.mxu1 %v416_v37 }
 0x10b   : > { %v484_v40 = vpop.f32.mrf.mxu0 }
 0x10c   : > { %v488_v41 = vadd.f32 %v484_v40, %v417_v39 }
 0x10d   : > { %v820_v5 = vpop.f32.mrf.mxu0 }
 0x10e   : > { %v574_v43 = vpop.f32.mrf.mxu1  ;;  %490 = vst.msk [vmem:[%s1173_s24] sm:$0xff] %vm489_vm2, %v488_v41 }
 0x10f   : > { %v578_v44 = vadd.f32 %v574_v43, %v491_v42 }
 0x110   : > { %948 = shalt.err (!%p945_p8)
}
 0x111   : > { %s949_s24 = scalar_lea.hbm %s1332_s23, 128  ;;  %s953_s30 = scalar_lea.hbm %s1420_s3, 256 }
 0x112   : > { %p950_p10 = scmp.ne.s32.totalorder %s1332_s23, %s949_s24  ;;  %p954_p13 = scmp.lt.s32.totalorder %s1332_s23, %s1420_s3 }
 0x113   : > { %p955_p0 = scmp.lt.s32.totalorder %s953_s30, %s949_s24 }
 0x114   : > { %p951_p11 = pnand %p950_p10, %p1138_p3 }
 0x115   : > { %p956_p1 = por %p955_p0, %p954_p13 }
 0x116   : > { %p952_p12 = pneg %p951_p11 }
 0x118   : > { %p957_p2 = pnand %p956_p1, %p952_p12 }
 0x11a   : > { %960 = shalt.err (!%p957_p2)
}
 0x11b   : > { %856 = dma.vmem_to_hbm [thread:$0]  (%p1138_p3), %s1334_s11, 128, %s1332_s23, %s581_s8   ;;  %v855_v45 = vpop.f32.mrf.mxu1  ;;  %579 = vst.msk [vmem:[%s1175_s29] sm:$0xff] %vm489_vm2, %v578_v44 }
 0x11c   : > { %s586_s0 = scalar_lea.sflag [#allocation5], %s1159_s6  ;;  %s961_s18 = scalar_lea.vmem %s1343_s12, 128 }
 0x11d   : > { %p962_p4 = scmp.ne.s32.totalorder %s1343_s12, %s961_s18  ;;  %s1063_s13 = smov [#allocation4]  }
 0x11e   : > { %s965_s14 = sshll.u32 %s1063_s13, 4  ;;  %s966_s14 = int_to_ptr.vmem [resolvable:$false] %s965_s14 }
 0x11f   : > { %p963_p5 = pnand %p962_p4, %p1138_p3  ;;  %s967_s24 = scalar_lea.vmem %s966_s14, 256 }
 0x120   : > { %p968_p7 = scmp.lt.s32.totalorder %s1343_s12, %s966_s14  ;;  %p969_p8 = scmp.lt.s32.totalorder %s967_s24, %s961_s18 }
 0x121   : > { %p964_p6 = pneg %p963_p5 }
 0x122   : > { %p970_p10 = por %p969_p8, %p968_p7 }
 0x124   : > { %p971_p11 = pnand %p970_p10, %p964_p6 }
 0x126   : > { %974 = shalt.err (!%p971_p11)
}
 0x127   : > { %s975_s29 = scalar_lea.hbm %s1341_s7, 128  ;;  %s979_s23 = scalar_lea.hbm %s1421_s4, 256 }
 0x128   : > { %p976_p12 = scmp.ne.s32.totalorder %s1341_s7, %s975_s29  ;;  %p980_p1 = scmp.lt.s32.totalorder %s1341_s7, %s1421_s4 }
 0x129   : > { %p981_p2 = scmp.lt.s32.totalorder %s979_s23, %s975_s29 }
 0x12a   : > { %p977_p13 = pnand %p976_p12, %p1138_p3 }
 0x12b   : > { %p982_p4 = por %p981_p2, %p980_p1 }
 0x12c   : > { %p978_p0 = pneg %p977_p13 }
 0x12e   : > { %p983_p5 = pnand %p982_p4, %p978_p0 }
 0x130   : > { %986 = shalt.err (!%p983_p5)
}
 0x131   : > { %857 = dma.vmem_to_hbm [thread:$0]  (%p1138_p3), %s1343_s12, 128, %s1341_s7, %s586_s0  }
 0x132 PF: > { %p867_p6 = scmp.ge.s32.totalorder %s1057_s22, 2  ;;  %s624_s19 = sand.u32 1, %s1029_s15  }
 0x133   : > { %s625_s30 = scalar_lea.sflag [#allocation3], %s624_s19 }
 0x134   : > { %p861_p7 = pnand %p867_p6, %p1148_p9 }
 0x136   : > { %p862_p8 = pneg %p861_p7 }
 0x138   : > { %1020 = dma.done.wait (%p862_p8), %s625_s30, 128  }
 0x139   : > { %1022 = vsyncadd (%p862_p8), %s625_s30, 4294967168  ;;  %s634_s9 = scalar_lea.sflag [#allocation5], %s624_s19 }
 0x13a   : > { %1024 = dma.done.wait (%p862_p8), %s634_s9, 128  }
 0x13b   : > { %1026 = vsyncadd (%p862_p8), %s634_s9, 4294967168  ;;  %s21_s22 = sadd.s32 1, %s1057_s22   ;;  %s1426_s15 = smov %s1033_s16 }
 0x13c   : > { %p18_p10 = scmp.ge.s32.totalorder %s21_s22, 6   ;;  %s1427_s16 = smov %s1037_s17 }
 0x13d   : > { %s1428_s17 = smov %s1156_s5  ;;  %s1429_s18 = smov %s1049_s20 }
 0x13e   : > { %s1430_s19 = smov %s1053_s21  ;;  %s1431_s20 = smov %s1434_s25 }
 0x13f   : > { %s1432_s21 = smov %s1438_s26  ;;  %20 = sbr.rel (!%p18_p10) target bundleno = 9 (0x9), region = 88 }
 0x144   :  { %639 = vsyncpa [#allocation3], 1 }
 0x145   :  { %641 = vsyncpa [#allocation3 + $0x1], 1 }
 0x146   :  { %642 = vsyncpa [#allocation5], 1 }
 0x147   :  { %644 = vsyncpa [#allocation5 + $0x1], 1 }

</bundles_post_ra>
